<compile_context>
chip_gen: v7x
topology: tpu7x:2x2x1
jax: 0.10.0
libtpu: 0.0.40
codegen_flags: <defaults>
</compile_context>

<pallas_src>
import functools

import numpy as np
import jax
import jax.numpy as jnp
from jax.experimental import pallas as pl
from jax.experimental.pallas import tpu as pltpu


# ----------------------------------------------------------------------------
# Schedule construction (plain numpy, same as PyTorch __init__ — parameter setup)
# ----------------------------------------------------------------------------
def clip_noise_schedule(alphas2, clip_value=0.001):
    alphas2 = np.concatenate([np.ones(1), alphas2], axis=0)
    alphas_step = alphas2[1:] / alphas2[:-1]
    alphas_step = np.clip(alphas_step, a_min=clip_value, a_max=1.0)
    alphas2 = np.cumprod(alphas_step, axis=0)
    return alphas2


def polynomial_schedule(timesteps: int, s=0.0001, power=1.0):
    steps = timesteps + 1
    x = np.linspace(0, steps, steps)
    alphas2 = (1 - np.power(x / steps, power)) ** 2
    alphas2 = clip_noise_schedule(alphas2, clip_value=0.001)
    precision = 1 - 2 * s
    alphas2 = precision * alphas2 + s
    return alphas2


def make_gamma_table(noise_schedule: str, timesteps: int, precision: float) -> np.ndarray:
    splits = noise_schedule.split("_")
    assert len(splits) == 2
    power = float(splits[1])
    alphas2 = polynomial_schedule(timesteps, s=precision, power=power)
    sigmas2 = 1 - alphas2
    log_alphas2 = np.log(alphas2)
    log_sigmas2 = np.log(sigmas2)
    log_alphas2_to_sigmas2 = log_alphas2 - log_sigmas2
    gamma = (-log_alphas2_to_sigmas2).astype(np.float32)  # shape (timesteps + 1,)
    return gamma


# ----------------------------------------------------------------------------
# Pallas kernel: out[r, l] = gamma[clip(round(t[r, l] * timesteps), 0, timesteps)]
#
#   t_ref:     (row_blk, 128)  float32   VMEM, flattened batch, lane-major
#   gamma_ref: (timesteps+1,)  float32   SMEM, schedule table (scalar reads)
#   out_ref:   (row_blk, 128)  float32   VMEM, single unmasked full-tile store
# ----------------------------------------------------------------------------
def _gamma_lookup_kernel(t_ref, gamma_ref, out_ref, *, timesteps, unroll_table):
    t_blk = t_ref[...]                                               # (row_blk, 128)
    # round-half-to-even (matches torch.round / np.round), clamp to table range.
    # Clamp is a documented deviation: PyTorch would OOB-index for t outside [0,1].
    t_int = jnp.round(t_blk * float(timesteps)).astype(jnp.int32)
    t_int = jnp.clip(t_int, 0, timesteps)                            # (row_blk, 128)

    # Compare-select sweep over the table: pure VPU work on the full block,
    # no one-hot materialization, no XLU reductions, no per-row stores.
    acc = jnp.full(t_blk.shape, gamma_ref[0], dtype=jnp.float32)
    if unroll_table:
        for k in range(1, timesteps + 1):                            # static unroll
            acc = jnp.where(t_int == k, gamma_ref[k], acc)
    else:
        def body(k, acc):
            return jnp.where(t_int == k, gamma_ref[k], acc)
        acc = jax.lax.fori_loop(1, timesteps + 1, body, acc)

    out_ref[...] = acc                                               # lane-dense vst


# ----------------------------------------------------------------------------
# Module wrapper
# ----------------------------------------------------------------------------
class PredefinedNoiseSchedulePallas:
    """Pallas/JAX port of PredefinedNoiseSchedule (non-learned lookup table)."""

    _LANES = 128
    _ROW_TILE = 512          # big tiles -> pipeline overhead amortized (fits VMEM on v5e/v6e/v7x)
    _UNROLL_TABLE_MAX = 64   # static-unroll the k-loop for small tables, fori_loop otherwise

    def __init__(self, noise_schedule: str, timesteps: int, precision: float):
        self.timesteps = timesteps
        gamma = make_gamma_table(noise_schedule, timesteps, precision)
        self.gamma = jnp.asarray(gamma)          # (T+1,) reference copy
        self.gamma_smem = jnp.asarray(gamma)     # (T+1,) kernel input (lives in SMEM)
        self._fns = {}                           # shape -> jitted callable

    def _build_fn(self, t_shape):
        lanes = self._LANES
        n_flat = int(np.prod(t_shape)) if len(t_shape) > 0 else 1
        rows = -(-n_flat // lanes)  # ceil

        if rows <= self._ROW_TILE:
            row_blk = rows           # full-array block (satisfies tiling rule)
            rows_pad = rows
        else:
            # TODO(synk): on v7x, cap row_blk at rows_pad // 2 so both TensorCores
            # get work; on v5e/v6e (single TC) the bigger tile is strictly better.
            row_blk = self._ROW_TILE
            rows_pad = -(-rows // self._ROW_TILE) * self._ROW_TILE

        grid = (rows_pad // row_blk,)
        total_pad = rows_pad * lanes
        needs_pad = total_pad != n_flat

        kernel = functools.partial(
            _gamma_lookup_kernel,
            timesteps=self.timesteps,
            unroll_table=(self.timesteps + 1) <= self._UNROLL_TABLE_MAX,
        )

        pallas_fn = pl.pallas_call(
            kernel,
            out_shape=jax.ShapeDtypeStruct((rows_pad, lanes), jnp.float32),
            grid=grid,
            in_specs=[
                pl.BlockSpec((row_blk, lanes), lambda i: (i, 0)),             # t, lane-major
                pl.BlockSpec(memory_space=pltpu.MemorySpace.SMEM),            # gamma table
            ],
            out_specs=pl.BlockSpec((row_blk, lanes), lambda i: (i, 0)),
            compiler_params=pltpu.CompilerParams(
                dimension_semantics=("parallel",),
            ),
        )

        gamma_smem = self.gamma_smem

        @jax.jit
        def fn(t):
            t_flat = t.reshape(-1).astype(jnp.float32)
            if needs_pad:
                t_flat = jnp.pad(t_flat, (0, total_pad - n_flat))
            t_2d = t_flat.reshape(rows_pad, lanes)          # reshape only: metadata-free
            out_2d = pallas_fn(t_2d, gamma_smem)
            out_flat = out_2d.reshape(-1)
            if needs_pad:
                out_flat = out_flat[:n_flat]
            return out_flat.reshape(t.shape)

        return fn

    def __call__(self, t: jnp.ndarray) -> jnp.ndarray:
        key = tuple(t.shape)
        fn = self._fns.get(key)
        if fn is None:
            fn = self._build_fn(key)
            self._fns[key] = fn
        return fn(t)


# ----------------------------------------------------------------------------
# main
# ----------------------------------------------------------------------------
if __name__ == "__main__":
    timesteps = 16
    module = PredefinedNoiseSchedulePallas("polynomial_2.0", timesteps=timesteps, precision=1e-4)
    gamma_np = np.asarray(module.gamma)

    def ref_forward(t_np):
        t_int = np.clip(np.round(t_np * timesteps).astype(np.int64), 0, timesteps)
        return gamma_np[t_int]

    key = jax.random.PRNGKey(0)
    k1, k2 = jax.random.split(key)

    # Small input matching the module's typical use: per-sample diffusion time, (B, 1).
    B = 8
    t_small = jax.random.uniform(k1, (B, 1), dtype=jnp.float32)      # t in [0, 1)
    out_small = jax.block_until_ready(module(t_small))
    out_small2 = jax.block_until_ready(module(t_small))              # cached callable, no retrace
    np.testing.assert_allclose(np.asarray(out_small), ref_forward(np.asarray(t_small)),
                               rtol=1e-6, atol=1e-6)
    np.testing.assert_allclose(np.asarray(out_small2), ref_forward(np.asarray(t_small)),
                               rtol=1e-6, atol=1e-6)

    # Slightly larger input to exercise the no-pad, multi-tile-row path.
    t_big = jax.random.uniform(k2, (2, 4, 16, 16), dtype=jnp.float32)
    out_big = jax.block_until_ready(module(t_big))
    np.testing.assert_allclose(np.asarray(out_big), ref_forward(np.asarray(t_big)),
                               rtol=1e-6, atol=1e-6)

    print("KERNEL_OK")
</pallas_src>

<mosaic_0001>
module attributes {stable_mosaic.version = 11 : i64} {
  func.func @_gamma_lookup_kernel(%arg0: i32, %arg1: memref<1x128xf32, #tpu.memory_space<vmem>>, %arg2: memref<17xf32, #tpu.memory_space<smem>>, %arg3: memref<1x128xf32, #tpu.memory_space<vmem>>) attributes {dimension_semantics = [#tpu.dimension_semantics<parallel>], iteration_bounds = array<i64: 1>, scalar_prefetch = 0 : i64, scratch_operands = 0 : i64, tpu.core_type = #tpu.core_type<tc>, window_params = [{transform_indices = @transform_0, window_bounds = array<i64: 1, 128>}, {transform_indices = @transform_1, window_bounds = array<i64: 17>}, {transform_indices = @transform_2, window_bounds = array<i64: 1, 128>}]} {
    %c0 = arith.constant 0 : index
    %c0_0 = arith.constant 0 : index
    %0 = vector.load %arg1[%c0, %c0_0] : memref<1x128xf32, #tpu.memory_space<vmem>>, vector<1x128xf32>
    %cst = arith.constant 1.600000e+01 : f32
    %1 = vector.broadcast %cst : f32 to vector<1x128xf32>
    %2 = arith.mulf %0, %1 : vector<1x128xf32>
    %3 = math.roundeven %2 : vector<1x128xf32>
    %4 = arith.fptosi %3 : vector<1x128xf32> to vector<1x128xi32>
    %c0_i32 = arith.constant 0 : i32
    %c16_i32 = arith.constant 16 : i32
    %5 = vector.broadcast %c0_i32 : i32 to vector<1x128xi32>
    %6 = arith.maxsi %5, %4 : vector<1x128xi32>
    %7 = vector.broadcast %c16_i32 : i32 to vector<1x128xi32>
    %8 = arith.minsi %7, %6 : vector<1x128xi32>
    %c0_1 = arith.constant 0 : index
    %9 = memref.load %arg2[%c0_1] : memref<17xf32, #tpu.memory_space<smem>>
    %10 = vector.broadcast %9 : f32 to vector<1x128xf32>
    %c1_i32 = arith.constant 1 : i32
    %11 = vector.broadcast %c1_i32 : i32 to vector<1x128xi32>
    %12 = arith.cmpi eq, %8, %11 : vector<1x128xi32>
    %c1 = arith.constant 1 : index
    %13 = memref.load %arg2[%c1] : memref<17xf32, #tpu.memory_space<smem>>
    %14 = vector.broadcast %13 : f32 to vector<1x128xf32>
    %15 = arith.select %12, %14, %10 : vector<1x128xi1>, vector<1x128xf32>
    %c2_i32 = arith.constant 2 : i32
    %16 = vector.broadcast %c2_i32 : i32 to vector<1x128xi32>
    %17 = arith.cmpi eq, %8, %16 : vector<1x128xi32>
    %c2 = arith.constant 2 : index
    %18 = memref.load %arg2[%c2] : memref<17xf32, #tpu.memory_space<smem>>
    %19 = vector.broadcast %18 : f32 to vector<1x128xf32>
    %20 = arith.select %17, %19, %15 : vector<1x128xi1>, vector<1x128xf32>
    %c3_i32 = arith.constant 3 : i32
    %21 = vector.broadcast %c3_i32 : i32 to vector<1x128xi32>
    %22 = arith.cmpi eq, %8, %21 : vector<1x128xi32>
    %c3 = arith.constant 3 : index
    %23 = memref.load %arg2[%c3] : memref<17xf32, #tpu.memory_space<smem>>
    %24 = vector.broadcast %23 : f32 to vector<1x128xf32>
    %25 = arith.select %22, %24, %20 : vector<1x128xi1>, vector<1x128xf32>
    %c4_i32 = arith.constant 4 : i32
    %26 = vector.broadcast %c4_i32 : i32 to vector<1x128xi32>
    %27 = arith.cmpi eq, %8, %26 : vector<1x128xi32>
    %c4 = arith.constant 4 : index
    %28 = memref.load %arg2[%c4] : memref<17xf32, #tpu.memory_space<smem>>
    %29 = vector.broadcast %28 : f32 to vector<1x128xf32>
    %30 = arith.select %27, %29, %25 : vector<1x128xi1>, vector<1x128xf32>
    %c5_i32 = arith.constant 5 : i32
    %31 = vector.broadcast %c5_i32 : i32 to vector<1x128xi32>
    %32 = arith.cmpi eq, %8, %31 : vector<1x128xi32>
    %c5 = arith.constant 5 : index
    %33 = memref.load %arg2[%c5] : memref<17xf32, #tpu.memory_space<smem>>
    %34 = vector.broadcast %33 : f32 to vector<1x128xf32>
    %35 = arith.select %32, %34, %30 : vector<1x128xi1>, vector<1x128xf32>
    %c6_i32 = arith.constant 6 : i32
    %36 = vector.broadcast %c6_i32 : i32 to vector<1x128xi32>
    %37 = arith.cmpi eq, %8, %36 : vector<1x128xi32>
    %c6 = arith.constant 6 : index
    %38 = memref.load %arg2[%c6] : memref<17xf32, #tpu.memory_space<smem>>
    %39 = vector.broadcast %38 : f32 to vector<1x128xf32>
    %40 = arith.select %37, %39, %35 : vector<1x128xi1>, vector<1x128xf32>
    %c7_i32 = arith.constant 7 : i32
    %41 = vector.broadcast %c7_i32 : i32 to vector<1x128xi32>
    %42 = arith.cmpi eq, %8, %41 : vector<1x128xi32>
    %c7 = arith.constant 7 : index
    %43 = memref.load %arg2[%c7] : memref<17xf32, #tpu.memory_space<smem>>
    %44 = vector.broadcast %43 : f32 to vector<1x128xf32>
    %45 = arith.select %42, %44, %40 : vector<1x128xi1>, vector<1x128xf32>
    %c8_i32 = arith.constant 8 : i32
    %46 = vector.broadcast %c8_i32 : i32 to vector<1x128xi32>
    %47 = arith.cmpi eq, %8, %46 : vector<1x128xi32>
    %c8 = arith.constant 8 : index
    %48 = memref.load %arg2[%c8] : memref<17xf32, #tpu.memory_space<smem>>
    %49 = vector.broadcast %48 : f32 to vector<1x128xf32>
    %50 = arith.select %47, %49, %45 : vector<1x128xi1>, vector<1x128xf32>
    %c9_i32 = arith.constant 9 : i32
    %51 = vector.broadcast %c9_i32 : i32 to vector<1x128xi32>
    %52 = arith.cmpi eq, %8, %51 : vector<1x128xi32>
    %c9 = arith.constant 9 : index
    %53 = memref.load %arg2[%c9] : memref<17xf32, #tpu.memory_space<smem>>
    %54 = vector.broadcast %53 : f32 to vector<1x128xf32>
    %55 = arith.select %52, %54, %50 : vector<1x128xi1>, vector<1x128xf32>
    %c10_i32 = arith.constant 10 : i32
    %56 = vector.broadcast %c10_i32 : i32 to vector<1x128xi32>
    %57 = arith.cmpi eq, %8, %56 : vector<1x128xi32>
    %c10 = arith.constant 10 : index
    %58 = memref.load %arg2[%c10] : memref<17xf32, #tpu.memory_space<smem>>
    %59 = vector.broadcast %58 : f32 to vector<1x128xf32>
    %60 = arith.select %57, %59, %55 : vector<1x128xi1>, vector<1x128xf32>
    %c11_i32 = arith.constant 11 : i32
    %61 = vector.broadcast %c11_i32 : i32 to vector<1x128xi32>
    %62 = arith.cmpi eq, %8, %61 : vector<1x128xi32>
    %c11 = arith.constant 11 : index
    %63 = memref.load %arg2[%c11] : memref<17xf32, #tpu.memory_space<smem>>
    %64 = vector.broadcast %63 : f32 to vector<1x128xf32>
    %65 = arith.select %62, %64, %60 : vector<1x128xi1>, vector<1x128xf32>
    %c12_i32 = arith.constant 12 : i32
    %66 = vector.broadcast %c12_i32 : i32 to vector<1x128xi32>
    %67 = arith.cmpi eq, %8, %66 : vector<1x128xi32>
    %c12 = arith.constant 12 : index
    %68 = memref.load %arg2[%c12] : memref<17xf32, #tpu.memory_space<smem>>
    %69 = vector.broadcast %68 : f32 to vector<1x128xf32>
    %70 = arith.select %67, %69, %65 : vector<1x128xi1>, vector<1x128xf32>
    %c13_i32 = arith.constant 13 : i32
    %71 = vector.broadcast %c13_i32 : i32 to vector<1x128xi32>
    %72 = arith.cmpi eq, %8, %71 : vector<1x128xi32>
    %c13 = arith.constant 13 : index
    %73 = memref.load %arg2[%c13] : memref<17xf32, #tpu.memory_space<smem>>
    %74 = vector.broadcast %73 : f32 to vector<1x128xf32>
    %75 = arith.select %72, %74, %70 : vector<1x128xi1>, vector<1x128xf32>
    %c14_i32 = arith.constant 14 : i32
    %76 = vector.broadcast %c14_i32 : i32 to vector<1x128xi32>
    %77 = arith.cmpi eq, %8, %76 : vector<1x128xi32>
    %c14 = arith.constant 14 : index
    %78 = memref.load %arg2[%c14] : memref<17xf32, #tpu.memory_space<smem>>
    %79 = vector.broadcast %78 : f32 to vector<1x128xf32>
    %80 = arith.select %77, %79, %75 : vector<1x128xi1>, vector<1x128xf32>
    %c15_i32 = arith.constant 15 : i32
    %81 = vector.broadcast %c15_i32 : i32 to vector<1x128xi32>
    %82 = arith.cmpi eq, %8, %81 : vector<1x128xi32>
    %c15 = arith.constant 15 : index
    %83 = memref.load %arg2[%c15] : memref<17xf32, #tpu.memory_space<smem>>
    %84 = vector.broadcast %83 : f32 to vector<1x128xf32>
    %85 = arith.select %82, %84, %80 : vector<1x128xi1>, vector<1x128xf32>
    %c16_i32_2 = arith.constant 16 : i32
    %86 = vector.broadcast %c16_i32_2 : i32 to vector<1x128xi32>
    %87 = arith.cmpi eq, %8, %86 : vector<1x128xi32>
    %c16 = arith.constant 16 : index
    %88 = memref.load %arg2[%c16] : memref<17xf32, #tpu.memory_space<smem>>
    %89 = vector.broadcast %88 : f32 to vector<1x128xf32>
    %90 = arith.select %87, %89, %85 : vector<1x128xi1>, vector<1x128xf32>
    %c0_3 = arith.constant 0 : index
    %c0_4 = arith.constant 0 : index
    %91 = vector.load %arg3[%c0_3, %c0_4] : memref<1x128xf32, #tpu.memory_space<vmem>>, vector<1x128xf32>
    tpu.vector_store %arg3[%c0_3, %c0_4], %90 {strides = array<i32>} : memref<1x128xf32, #tpu.memory_space<vmem>>, vector<1x128xf32>,
    return
  }
  func.func @transform_0(%arg0: i32) -> (i32, i32) {
    %c0_i32 = arith.constant 0 : i32
    %c0_i32_0 = arith.constant 0 : i32
    return %arg0, %c0_i32 : i32, i32
  }
  func.func @transform_1(%arg0: i32) -> i32 {
    %c0_i32 = arith.constant 0 : i32
    %c0_i32_0 = arith.constant 0 : i32
    return %c0_i32 : i32
  }
  func.func @transform_2(%arg0: i32) -> (i32, i32) {
    %c0_i32 = arith.constant 0 : i32
    %c0_i32_0 = arith.constant 0 : i32
    return %arg0, %c0_i32 : i32, i32
  }
}

</mosaic_0001>

<bundles_post_ra>
// kernel: fn.1
= control target key start
LH: loop header
LB: loop body
LE: loop exit
PB: predicated region body
PF: predicated region fallthrough
CT: control target
= control target key end

     0   :  { %7 = vsyncpa [#allocation3], 0  ;;  %s195_s0 = inlined_call_operand.vmem [shape: f32[1,128], index: 0, kind: input, shape index: {}]   ;;  %s196_s1 = inlined_call_operand.vmem [shape: f32[17], index: 1, kind: input, shape index: {}]   ;;  %s197_s2 = inlined_call_operand.vmem [shape: f32[1,128], index: 2, kind: output, shape index: {}]  }
   0x1   :  { %s16_s11 = sshll.u32 %s196_s1, 4  ;;  %s17_s11 = int_to_ptr.vmem [resolvable:$true] %s16_s11 }
   0x2   :  { %s123_s12 = scalar_lea.vmem %s17_s11, 16  ;;  %p128_p1 = scmp.lt.s32.totalorder %s17_s11, %s17_s11 }
   0x3   :  { %p124_p0 = scmp.ne.s32.totalorder %s17_s11, %s123_s12  ;;  %p129_p2 = scmp.lt.s32.totalorder %s123_s12, %s123_s12 }
   0x5   :  { %p130_p3 = por %p129_p2, %p128_p1 }
   0x7   :  { %p131_p4 = pnand %p130_p3, %p124_p0 }
   0x9   :  { %134 = shalt.err (!%p131_p4)
}
   0xa   :  { %s137_s13 = smov [#allocation2]  }
   0xb   :  { %19 = dma.vmem_to_smem %s17_s11, 16, %s137_s13, [#allocation3]  }
   0xc   :  { %135 = dma.done.wait [#allocation3], 16  }
   0xd   :  { %136 = vsyncadd [#allocation3], 4294967280 }
   0xe   :  { %23 = sfence }
   0xf   :  { %v24_v0 = vld [vmem:[%s195_s0] sm:$0x1]  ;;  %s31_s16 = sld [smem:[#allocation2]]  ;;  %s103_s17 = sld [smem:[#allocation2 + $0x1]] }
  0x10   :  { %v25_v1 = vmul.f32 16.0, %v24_v0  ;;  %s104_s1 = sld [smem:[#allocation2 + $0x2]]  ;;  %s105_s18 = sld [smem:[#allocation2 + $0x3]] }
  0x11   :  { %s159_s19 = sld [smem:[#allocation2 + $0x4]]  ;;  %s161_s20 = sld [smem:[#allocation2 + $0x5]] }
  0x12   :  { %v121_v2 = vcvt.f32.s32 %v25_v1  ;;  %s163_s21 = sld [smem:[#allocation2 + $0x6]]  ;;  %s165_s22 = sld [smem:[#allocation2 + $0x7]] }
  0x13   :  { %s167_s23 = sld [smem:[#allocation2 + $0x8]]  ;;  %s169_s0 = sld [smem:[#allocation2 + $0x9]] }
  0x14   :  { %vm27_vm0 = vcmp.gt.s32.totalorder %v121_v2, 0  ;;  %s171_s24 = sld [smem:[#allocation2 + $0xa]]  ;;  %s173_s25 = sld [smem:[#allocation2 + $0xb]] }
  0x15   :  { %v28_v3 = vsel %vm27_vm0, %v121_v2, 0  ;;  %v32_v4 = vstv %s31_s16  ;;  %v35_v5 = vstv %s103_s17  ;;  %s176_s26 = sld [smem:[#allocation2 + $0xc]]  ;;  %s179_s27 = sld [smem:[#allocation2 + $0xd]] }
  0x16   :  { %vm29_vm1 = vcmp.lt.s32.totalorder %v28_v3, 16  ;;  %v39_v7 = vstv %s104_s1  ;;  %v43_v8 = vstv %s105_s18  ;;  %s182_s28 = sld [smem:[#allocation2 + $0xe]]  ;;  %s117_s29 = sld [smem:[#allocation2 + $0xf]] }
  0x17   :  { %v30_v6 = vsel %vm29_vm1, %v28_v3, 16  ;;  %v47_v10 = vstv %s159_s19  ;;  %v51_v12 = vstv %s161_s20  ;;  %s118_s30 = sld [smem:[#allocation2 + $0x10]] }
  0x18   :  { %vm33_vm2 = vcmp.eq.s32.totalorder %v30_v6, 1  ;;  %vm37_vm3 = vcmp.eq.s32.totalorder %v30_v6, 2  ;;  %vm41_vm4 = vcmp.eq.s32.totalorder %v30_v6, 3  ;;  %vm45_vm5 = vcmp.eq.s32.totalorder %v30_v6, 4 }
  0x19   :  { %v36_v9 = vsel %vm33_vm2, %v35_v5, %v32_v4  ;;  %vm49_vm6 = vcmp.eq.s32.totalorder %v30_v6, 5  ;;  %vm53_vm7 = vcmp.eq.s32.totalorder %v30_v6, 6  ;;  %v55_v14 = vstv %s163_s21 }
  0x1a   :  { %v40_v11 = vsel %vm37_vm3, %v39_v7, %v36_v9  ;;  %vm57_vm8 = vcmp.eq.s32.totalorder %v30_v6, 7  ;;  %v59_v16 = vstv %s165_s22  ;;  %vm61_vm9 = vcmp.eq.s32.totalorder %v30_v6, 8 }
  0x1b   :  { %v44_v13 = vsel %vm41_vm4, %v43_v8, %v40_v11  ;;  %v63_v18 = vstv %s167_s23  ;;  %vm65_vm10 = vcmp.eq.s32.totalorder %v30_v6, 9  ;;  %v67_v20 = vstv %s169_s0 }
  0x1c   :  { %v48_v15 = vsel %vm45_vm5, %v47_v10, %v44_v13  ;;  %vm69_vm11 = vcmp.eq.s32.totalorder %v30_v6, 10  ;;  %v71_v22 = vstv %s171_s24  ;;  %vm73_vm12 = vcmp.eq.s32.totalorder %v30_v6, 11 }
  0x1d   :  { %v52_v17 = vsel %vm49_vm6, %v51_v12, %v48_v15  ;;  %v75_v24 = vstv %s173_s25  ;;  %vm77_vm13 = vcmp.eq.s32.totalorder %v30_v6, 12  ;;  %v79_v26 = vstv %s176_s26 }
  0x1e   :  { %v56_v19 = vsel %vm53_vm7, %v55_v14, %v52_v17  ;;  %vm81_vm14 = vcmp.eq.s32.totalorder %v30_v6, 13  ;;  %v83_v28 = vstv %s179_s27  ;;  %vm85_vm15 = vcmp.eq.s32.totalorder %v30_v6, 14 }
  0x1f   :  { %v60_v21 = vsel %vm57_vm8, %v59_v16, %v56_v19  ;;  %v87_v30 = vstv %s182_s28  ;;  %vm89_vm0 = vcmp.eq.s32.totalorder %v30_v6, 15  ;;  %v91_v32 = vstv %s117_s29 }
  0x20   :  { %v64_v23 = vsel %vm61_vm9, %v63_v18, %v60_v21  ;;  %vm93_vm1 = vcmp.eq.s32.totalorder %v30_v6, 16  ;;  %v95_v34 = vstv %s118_s30 }
  0x21   :  { %v68_v25 = vsel %vm65_vm10, %v67_v20, %v64_v23 }
  0x22   :  { %v72_v27 = vsel %vm69_vm11, %v71_v22, %v68_v25 }
  0x23   :  { %v76_v29 = vsel %vm73_vm12, %v75_v24, %v72_v27 }
  0x24   :  { %v80_v31 = vsel %vm77_vm13, %v79_v26, %v76_v29 }
  0x25   :  { %v84_v33 = vsel %vm81_vm14, %v83_v28, %v80_v31 }
  0x26   :  { %v88_v35 = vsel %vm85_vm15, %v87_v30, %v84_v33 }
  0x27   :  { %v92_v36 = vsel %vm89_vm0, %v91_v32, %v88_v35 }
  0x28   :  { %v96_v37 = vsel %vm93_vm1, %v95_v34, %v92_v36 }
  0x29   :  { %97 = vst [vmem:[%s197_s2] sm:$0x1] %v96_v37 }
  0x2a   :  { %102 = vsyncpa [#allocation3], 1 }

</bundles_post_ra>
